<compile_context>
chip_gen: v7x
topology: tpu7x:2x2x1
jax: 0.10.0
libtpu: 0.0.40
codegen_flags: <defaults>
</compile_context>

<pallas_src>
import functools

import numpy as np

import jax
import jax.numpy as jnp
from jax.experimental import pallas as pl
from jax.experimental.pallas import tpu as pltpu


def _round_up(a: int, b: int) -> int:
    return ((a + b - 1) // b) * b


def _largest_tile(dim_pad: int, want: int, align: int = 128) -> int:
    """Largest multiple of `align` <= min(want, dim_pad) that divides dim_pad."""
    cap = max(align, min(_round_up(want, align), dim_pad))
    for t in range(cap, align - 1, -align):
        if dim_pad % t == 0:
            return t
    return align


def _plan_m(m: int, want: int):
    """Pick (M_pad, tile_m): tile_m multiple of 8, balanced so padding is small."""
    want = max(8, _round_up(want, 8))
    m_align = _round_up(m, 8)
    if m_align <= want:
        return m_align, m_align
    num_tiles = -(-m // want)
    tile = _round_up(-(-m // num_tiles), 8)
    return _round_up(m, tile), tile


# ----------------------------------------------------------------------------
# Pallas kernel: tiled Linear layer + activation statistics, fused.
# Grid = (N tiles, M tiles, K tiles); N parallel (megacore), M/K arbitrary
# (they carry the matmul / statistics accumulators).
# ----------------------------------------------------------------------------
def _linear_stats_kernel(x_ref, w_ref, b_ref,            # inputs
                         out_ref, sum_ref, sumsq_ref,    # outputs
                         *scratch,                       # VMEM scratch
                         pad_rows, use_out_acc):
    if use_out_acc:
        # f32 output: accumulate straight into the VMEM-resident output block.
        ssum_ref, ssq_ref = scratch
        acc_ref = out_ref
    else:
        acc_ref, ssum_ref, ssq_ref = scratch

    m_idx = pl.program_id(1)
    k_idx = pl.program_id(2)
    m_last = pl.num_programs(1) - 1
    k_last = pl.num_programs(2) - 1

    # Zero the K accumulator at the start of each (n, m) output tile.
    @pl.when(k_idx == 0)
    def _():
        acc_ref[...] = jnp.zeros_like(acc_ref)

    # Zero the per-N-tile statistic accumulators at the start of each N tile.
    @pl.when((m_idx == 0) & (k_idx == 0))
    def _():
        ssum_ref[...] = jnp.zeros_like(ssum_ref)
        ssq_ref[...] = jnp.zeros_like(ssq_ref)

    # MXU matmul (bf16 feed by default), f32 accumulation.
    acc_ref[...] += jnp.dot(x_ref[...], w_ref[...],
                            preferred_element_type=jnp.float32)

    # Bias add, output store and statistics only once the K reduction is done.
    @pl.when(k_idx == k_last)
    def _():
        b_f32 = b_ref[...].astype(jnp.float32)
        y = acc_ref[...].astype(jnp.float32) + b_f32
        out_ref[...] = y.astype(out_ref.dtype)

        # Sublane-preserving partial reduction: pure VPU adds into (8, tile_n)
        # scratch; the XLU cross-sublane collapse happens once per N tile.
        tm = y.shape[0]
        part = y.reshape(tm // 8, 8, y.shape[-1])
        ssum_ref[...] += jnp.sum(part, axis=0)
        ssq_ref[...] += jnp.sum(part * part, axis=0)

        @pl.when(m_idx == m_last)
        def _():
            s = jnp.sum(ssum_ref[...], axis=0, keepdims=True)
            sq = jnp.sum(ssq_ref[...], axis=0, keepdims=True)
            if pad_rows > 0:
                # Padded rows are all-zero in x, so each contributes exactly
                # the bias to y; subtract their contribution once (exact).
                s = s - pad_rows * b_f32
                sq = sq - pad_rows * (b_f32 * b_f32)
            sum_ref[...] = s
            sumsq_ref[...] = sq


@functools.partial(
    jax.jit,
    static_argnames=("n_valid", "tile_m", "tile_n", "tile_k",
                     "compute_dtype", "out_dtype"))
def linear_with_stats(x2d, w, b, *, n_valid=None,
                      tile_m=1024, tile_n=512, tile_k=512,
                      compute_dtype=jnp.bfloat16, out_dtype=None):
    """x2d: [M, K<=Kw], w: [Kw, N] (rows beyond K must be zero-padding),
    b: [1, <=N].  Returns (out [M, n_valid], sum [n_valid] f32, sum_sq f32)."""
    M, Kx = x2d.shape
    Kw, N = w.shape
    assert Kx <= Kw, "input features exceed weight rows"
    if n_valid is None:
        n_valid = N
    orig_dtype = x2d.dtype
    out_dtype = orig_dtype if out_dtype is None else out_dtype

    # ---- tiling plan (all static) -------------------------------------------
    K_pad = _round_up(Kw, 128)
    N_pad = _round_up(N, 128)
    tile_k = _largest_tile(K_pad, tile_k)
    tile_n = _largest_tile(N_pad, tile_n)
    # v7x megacore: the only "parallel" axis is N — make sure it has >= 2 tiles.
    if (N_pad // tile_n) < 2 and N_pad % 256 == 0:
        tile_n = N_pad // 2
    M_pad, tile_m = _plan_m(M, tile_m)
    pad_rows = M_pad - M

    # ---- dtype feed (bf16 MXU by default), guarded = no-op when pre-cast ----
    if compute_dtype is not None:
        if x2d.dtype != compute_dtype:
            x2d = x2d.astype(compute_dtype)
        if w.dtype != compute_dtype:
            w = w.astype(compute_dtype)
    if b.dtype != jnp.float32:
        b = b.astype(jnp.float32)

    # ---- padding (guarded: no-op when the wrapper pre-padded W / b) ---------
    if (M_pad, K_pad) != (M, Kx):
        x2d = jnp.pad(x2d, ((0, M_pad - M), (0, K_pad - Kx)))
    if (K_pad, N_pad) != (Kw, N):
        w = jnp.pad(w, ((0, K_pad - Kw), (0, N_pad - N)))
    if b.shape[1] != N_pad:
        b = jnp.pad(b, ((0, 0), (0, N_pad - b.shape[1])))

    use_out_acc = (np.dtype(out_dtype) == np.dtype(np.float32))

    grid = (N_pad // tile_n, M_pad // tile_m, K_pad // tile_k)

    scratch = []
    if not use_out_acc:
        scratch.append(pltpu.VMEM((tile_m, tile_n), jnp.float32))
    scratch += [pltpu.VMEM((8, tile_n), jnp.float32),   # partial sum
                pltpu.VMEM((8, tile_n), jnp.float32)]   # partial sum of squares

    x_it = np.dtype(x2d.dtype).itemsize
    w_it = np.dtype(w.dtype).itemsize
    o_it = np.dtype(out_dtype).itemsize
    cost = pl.CostEstimate(
        flops=2 * M_pad * K_pad * N_pad,
        transcendentals=0,
        bytes_accessed=int(M_pad * K_pad * x_it * (N_pad // tile_n)
                           + K_pad * N_pad * w_it * (M_pad // tile_m)
                           + M_pad * N_pad * o_it + 3 * N_pad * 4))

    vmem_plan = (2 * tile_m * tile_k * x_it + 2 * tile_k * tile_n * w_it
                 + 2 * tile_m * tile_n * o_it
                 + (0 if use_out_acc else tile_m * tile_n * 4)
                 + 2 * 8 * tile_n * 4 + 8 * tile_n * 4)
    # Cap below v7x's 64 MiB physical VMEM; v5e/v6e have 128 MiB.
    vmem_limit = int(min(max(2 * vmem_plan, 32 * 1024 * 1024), 56 * 1024 * 1024))

    kernel = functools.partial(_linear_stats_kernel,
                               pad_rows=pad_rows, use_out_acc=use_out_acc)

    out, s, ss = pl.pallas_call(
        kernel,
        out_shape=(
            jax.ShapeDtypeStruct((M_pad, N_pad), out_dtype),
            jax.ShapeDtypeStruct((1, N_pad), jnp.float32),
            jax.ShapeDtypeStruct((1, N_pad), jnp.float32),
        ),
        grid_spec=pltpu.PrefetchScalarGridSpec(
            num_scalar_prefetch=0,
            grid=grid,
            in_specs=[
                pl.BlockSpec((tile_m, tile_k), lambda n, m, k: (m, k)),  # x
                pl.BlockSpec((tile_k, tile_n), lambda n, m, k: (k, n)),  # w
                pl.BlockSpec((1, tile_n), lambda n, m, k: (0, n)),       # bias
            ],
            out_specs=[
                pl.BlockSpec((tile_m, tile_n), lambda n, m, k: (m, n)),  # out
                pl.BlockSpec((1, tile_n), lambda n, m, k: (0, n)),       # sum
                pl.BlockSpec((1, tile_n), lambda n, m, k: (0, n)),       # sumsq
            ],
            scratch_shapes=scratch,
        ),
        compiler_params=pltpu.CompilerParams(
            dimension_semantics=("parallel", "arbitrary", "arbitrary"),
            vmem_limit_bytes=vmem_limit,
        ),
        cost_estimate=cost,
    )(x2d, w, b)

    if M_pad == M and N_pad == n_valid:
        return out, s[0], ss[0]
    return out[:M, :n_valid], s[0, :n_valid], ss[0, :n_valid]


# ----------------------------------------------------------------------------
# JAX analogues of AnalysisLayerWrapper / AnalysisModelWrapper (glue only).
# ----------------------------------------------------------------------------
class AnalysisLayerWrapperJax:
    """Wraps a Linear layer; forward runs the fused Pallas kernel and
    accumulates running activation statistics (mirrors the torch wrapper)."""

    def __init__(self, weight, bias, label=None, store_activations=False,
                 compute_dtype=jnp.bfloat16):
        # torch Linear stores weight as [H_out, H_in]; kernel wants [H_in, H_out].
        w = jnp.asarray(weight).T
        b = jnp.asarray(bias).reshape(1, -1).astype(jnp.float32)
        K, N = w.shape
        self.k_valid, self.n_valid = int(K), int(N)
        # Pre-pad + pre-cast ONCE: no per-forward HBM rewrite of the weight.
        K_pad, N_pad = _round_up(K, 128), _round_up(N, 128)
        if (K_pad, N_pad) != (K, N):
            w = jnp.pad(w, ((0, K_pad - K), (0, N_pad - N)))
        if N_pad != N:
            b = jnp.pad(b, ((0, 0), (0, N_pad - N)))
        if compute_dtype is not None:
            w = w.astype(compute_dtype)
        self.w = w
        self.b = b
        self.label = label
        self.store_activations = store_activations
        self.compute_dtype = compute_dtype
        self.activations = []
        self.num_activations = None
        self.sum_activations = None
        self.sum_squared_activations = None

    def set_store_activations(self, v):
        self.store_activations = v

    def reset_activations(self):
        self.activations = []
        self.num_activations = None
        self.sum_activations = None
        self.sum_squared_activations = None

    def forward(self, x):
        orig_shape = x.shape
        x2d = x.reshape(-1, orig_shape[-1])       # == output.view(-1, last_dim)
        out2d, s, ss = linear_with_stats(
            x2d, self.w, self.b, n_valid=self.n_valid,
            compute_dtype=self.compute_dtype)
        out = out2d.reshape(orig_shape[:-1] + (self.n_valid,))

        if self.store_activations:
            # Keep on device — no blocking device_get per layer.
            self.activations.append(out)

        m = int(x2d.shape[0])
        if self.num_activations is None:
            self.num_activations = m
            self.sum_activations = s
            self.sum_squared_activations = ss
        else:
            self.num_activations += m
            self.sum_activations = self.sum_activations + s
            self.sum_squared_activations = self.sum_squared_activations + ss
        return out

    __call__ = forward

    def get_mean_activations(self):
        return self.sum_activations / self.num_activations

    def get_variance_activations(self):
        mean = self.sum_activations / self.num_activations
        return self.sum_squared_activations / self.num_activations - mean ** 2

    def get_stats(self):
        return {
            "path": self.label,
            "activations": self.activations,
            "mean_activations": self.get_mean_activations(),
            "variance_activations": self.get_variance_activations(),
        }


class AnalysisModelWrapperJax:
    """Minimal JAX analogue: sequential model whose Linear leaves are wrapped
    as analysis targets.  forward(x) == model(x)."""
    # TODO(synk): torch-module-tree traversal/blacklist wrapping is host-side
    # glue with no Pallas equivalent; layers are supplied explicitly here.

    def __init__(self, layers, store_activations=True):
        self.layers = layers  # ordered dict name -> AnalysisLayerWrapperJax
        self.set_store_activations(store_activations)

    def set_store_activations(self, v):
        self.store_activations = v
        for layer in self.layers.values():
            layer.set_store_activations(v)

    def reset_activations(self):
        for layer in self.layers.values():
            layer.reset_activations()

    def forward(self, x):
        h = x
        for layer in self.layers.values():
            h = layer(h)
        return h

    __call__ = forward

    def get_activations(self):
        return {name: layer.get_stats() for name, layer in self.layers.items()}


# ----------------------------------------------------------------------------
# Driver
# ----------------------------------------------------------------------------
if __name__ == "__main__":
    key = jax.random.PRNGKey(0)
    k_x, k_w1, k_b1, k_w2, k_b2, k_x2, k_w3, k_b3 = jax.random.split(key, 8)

    # ---------------- small demo consistent with the module ------------------
    batch, seq, hidden = 2, 8, 32  # M = batch*seq = 16

    w1 = jax.random.normal(k_w1, (hidden, hidden), dtype=jnp.float32) * 0.1
    b1 = jax.random.normal(k_b1, (hidden,), dtype=jnp.float32) * 0.1
    w2 = jax.random.normal(k_w2, (hidden, hidden), dtype=jnp.float32) * 0.1
    b2 = jax.random.normal(k_b2, (hidden,), dtype=jnp.float32) * 0.1

    model = AnalysisModelWrapperJax(
        {
            "fc1": AnalysisLayerWrapperJax(w1, b1, label="model_fc1"),
            "fc2": AnalysisLayerWrapperJax(w2, b2, label="model_fc1_fc2"),
        },
        store_activations=True,
    )

    x = jax.random.normal(k_x, (batch, seq, hidden), dtype=jnp.float32)

    out = model(x)
    stats = model.get_activations()
    jax.block_until_ready(out)
    jax.block_until_ready(stats["fc1"]["mean_activations"])
    jax.block_until_ready(stats["fc2"]["variance_activations"])

    # f32 reference (bf16 MXU feed introduces small, bounded error).
    ref1 = x.reshape(-1, hidden) @ w1.T + b1
    ref2 = ref1 @ w2.T + b2
    ref_out = ref2.reshape(batch, seq, hidden)
    assert jnp.allclose(out, ref_out, atol=5e-2, rtol=5e-2)
    assert jnp.allclose(stats["fc1"]["mean_activations"], ref1.mean(0),
                        atol=5e-2, rtol=5e-2)
    assert jnp.allclose(
        stats["fc2"]["variance_activations"],
        (ref2 ** 2).mean(0) - ref2.mean(0) ** 2,
        atol=5e-2, rtol=5e-2,
    )

    # --------- tiled-path self-test: multi-tile M/N/K + row padding ----------
    M2, K2, N2 = 300, 256, 384
    x2 = jax.random.normal(k_x2, (M2, K2), dtype=jnp.float32)
    w3 = jax.random.normal(k_w3, (K2, N2), dtype=jnp.float32) * 0.05
    b3 = (jax.random.normal(k_b3, (N2,), dtype=jnp.float32) * 0.05).reshape(1, -1)
    ref_o2 = x2 @ w3 + b3

    # f32 compute path, small tiles -> multi-tile grid + padded-row correction.
    o2, s2, ss2 = linear_with_stats(x2, w3, b3, tile_m=128, tile_n=128,
                                    tile_k=128, compute_dtype=jnp.float32)
    jax.block_until_ready(o2)
    assert jnp.allclose(o2, ref_o2, atol=1e-3, rtol=1e-3)
    assert jnp.allclose(s2, ref_o2.sum(0), atol=1e-2, rtol=1e-3)
    assert jnp.allclose(ss2, (ref_o2 ** 2).sum(0), atol=1e-1, rtol=1e-3)

    # bf16 default path (default tiles), looser tolerances.
    o3, s3, ss3 = linear_with_stats(x2, w3, b3)
    jax.block_until_ready(o3)
    assert jnp.allclose(o3, ref_o2, atol=1e-1, rtol=5e-2)
    assert jnp.allclose(s3, ref_o2.sum(0), atol=1.0, rtol=5e-2)
    assert jnp.allclose(ss3, (ref_o2 ** 2).sum(0), atol=5.0, rtol=5e-2)

    print("KERNEL_OK")
</pallas_src>

<mosaic_0001>
module attributes {stable_mosaic.version = 11 : i64} {
  func.func @_linear_stats_kernel(%arg0: i32, %arg1: i32, %arg2: i32, %arg3: memref<16x128xbf16, #tpu.memory_space<vmem>>, %arg4: memref<128x128xbf16, #tpu.memory_space<vmem>>, %arg5: memref<1x128xf32, #tpu.memory_space<vmem>>, %arg6: memref<16x128xf32, #tpu.memory_space<vmem>>, %arg7: memref<1x128xf32, #tpu.memory_space<vmem>>, %arg8: memref<1x128xf32, #tpu.memory_space<vmem>>, %arg9: memref<8x128xf32, #tpu.memory_space<vmem>>, %arg10: memref<8x128xf32, #tpu.memory_space<vmem>>) attributes {dimension_semantics = [#tpu.dimension_semantics<parallel>, #tpu.dimension_semantics<arbitrary>, #tpu.dimension_semantics<arbitrary>], iteration_bounds = array<i64: 1, 1, 1>, scalar_prefetch = 0 : i64, scratch_operands = 2 : i64, tpu.core_type = #tpu.core_type<tc>, window_params = [{transform_indices = @transform_0, window_bounds = array<i64: 16, 128>}, {transform_indices = @transform_1, window_bounds = array<i64: 128, 128>}, {transform_indices = @transform_2, window_bounds = array<i64: 1, 128>}, {transform_indices = @transform_3, window_bounds = array<i64: 16, 128>}, {transform_indices = @transform_4, window_bounds = array<i64: 1, 128>}, {transform_indices = @transform_5, window_bounds = array<i64: 1, 128>}]} {
    %c0_i32 = arith.constant 0 : i32
    %0 = arith.cmpi eq, %arg2, %c0_i32 : i32
    %1 = arith.extui %0 : i1 to i32
    %c0_i32_0 = arith.constant 0 : i32
    %2 = arith.cmpi ne, %1, %c0_i32_0 : i32
    scf.if %2 {
      %cst_13 = arith.constant 0.000000e+00 : f32
      %17 = vector.broadcast %cst_13 : f32 to vector<16x128xf32>
      %c0_14 = arith.constant 0 : index
      %c0_15 = arith.constant 0 : index
      %18 = vector.load %arg6[%c0_14, %c0_15] : memref<16x128xf32, #tpu.memory_space<vmem>>, vector<16x128xf32>
      tpu.vector_store %arg6[%c0_14, %c0_15], %17 {strides = array<i32>} : memref<16x128xf32, #tpu.memory_space<vmem>>, vector<16x128xf32>,
    } else {
    }
    %c0_i32_1 = arith.constant 0 : i32
    %3 = arith.cmpi eq, %arg1, %c0_i32_1 : i32
    %c0_i32_2 = arith.constant 0 : i32
    %4 = arith.cmpi eq, %arg2, %c0_i32_2 : i32
    %5 = arith.andi %3, %4 : i1
    %6 = arith.extui %5 : i1 to i32
    %c0_i32_3 = arith.constant 0 : i32
    %7 = arith.cmpi ne, %6, %c0_i32_3 : i32
    scf.if %7 {
      %cst_13 = arith.constant 0.000000e+00 : f32
      %17 = vector.broadcast %cst_13 : f32 to vector<8x128xf32>
      %c0_14 = arith.constant 0 : index
      %c0_15 = arith.constant 0 : index
      %18 = vector.load %arg9[%c0_14, %c0_15] : memref<8x128xf32, #tpu.memory_space<vmem>>, vector<8x128xf32>
      tpu.vector_store %arg9[%c0_14, %c0_15], %17 {strides = array<i32>} : memref<8x128xf32, #tpu.memory_space<vmem>>, vector<8x128xf32>,
      %cst_16 = arith.constant 0.000000e+00 : f32
      %19 = vector.broadcast %cst_16 : f32 to vector<8x128xf32>
      %c0_17 = arith.constant 0 : index
      %c0_18 = arith.constant 0 : index
      %20 = vector.load %arg10[%c0_17, %c0_18] : memref<8x128xf32, #tpu.memory_space<vmem>>, vector<8x128xf32>
      tpu.vector_store %arg10[%c0_17, %c0_18], %19 {strides = array<i32>} : memref<8x128xf32, #tpu.memory_space<vmem>>, vector<8x128xf32>,
    } else {
    }
    %c0 = arith.constant 0 : index
    %c0_4 = arith.constant 0 : index
    %8 = vector.load %arg6[%c0, %c0_4] : memref<16x128xf32, #tpu.memory_space<vmem>>, vector<16x128xf32>
    %c0_5 = arith.constant 0 : index
    %c0_6 = arith.constant 0 : index
    %9 = vector.load %arg3[%c0_5, %c0_6] : memref<16x128xbf16, #tpu.memory_space<vmem>>, vector<16x128xbf16>
    %c0_7 = arith.constant 0 : index
    %c0_8 = arith.constant 0 : index
    %10 = vector.load %arg4[%c0_7, %c0_8] : memref<128x128xbf16, #tpu.memory_space<vmem>>, vector<128x128xbf16>
    %cst = arith.constant dense<0.000000e+00> : vector<16x128xf32>
    %11 = tpu.matmul %9, %10, %cst {dimension_numbers = #tpu.dot_dimension_numbers<[1], [0], [0], [1], [0, 0, 1, 1], [], []>} : vector<16x128xbf16>, vector<128x128xbf16>, vector<16x128xf32> -> vector<16x128xf32>
    %12 = arith.addf %8, %11 : vector<16x128xf32>
    %c0_9 = arith.constant 0 : index
    %c0_10 = arith.constant 0 : index
    %13 = vector.load %arg6[%c0_9, %c0_10] : memref<16x128xf32, #tpu.memory_space<vmem>>, vector<16x128xf32>
    tpu.vector_store %arg6[%c0_9, %c0_10], %12 {strides = array<i32>} : memref<16x128xf32, #tpu.memory_space<vmem>>, vector<16x128xf32>,
    %c0_i32_11 = arith.constant 0 : i32
    %14 = arith.cmpi eq, %arg2, %c0_i32_11 : i32
    %15 = arith.extui %14 : i1 to i32
    %c0_i32_12 = arith.constant 0 : i32
    %16 = arith.cmpi ne, %15, %c0_i32_12 : i32
    scf.if %16 {
      %c0_13 = arith.constant 0 : index
      %c0_14 = arith.constant 0 : index
      %17 = vector.load %arg5[%c0_13, %c0_14] : memref<1x128xf32, #tpu.memory_space<vmem>>, vector<1x128xf32>
      %c0_15 = arith.constant 0 : index
      %c0_16 = arith.constant 0 : index
      %18 = vector.load %arg6[%c0_15, %c0_16] : memref<16x128xf32, #tpu.memory_space<vmem>>, vector<16x128xf32>
      %19 = vector.broadcast %17 : vector<1x128xf32> to vector<16x128xf32>
      %20 = arith.addf %18, %19 : vector<16x128xf32>
      %c0_17 = arith.constant 0 : index
      %c0_18 = arith.constant 0 : index
      %21 = vector.load %arg6[%c0_17, %c0_18] : memref<16x128xf32, #tpu.memory_space<vmem>>, vector<16x128xf32>
      tpu.vector_store %arg6[%c0_17, %c0_18], %20 {strides = array<i32>} : memref<16x128xf32, #tpu.memory_space<vmem>>, vector<16x128xf32>,
      %22 = vector.shape_cast %20 : vector<16x128xf32> to vector<2x8x128xf32>
      %c0_19 = arith.constant 0 : index
      %c0_20 = arith.constant 0 : index
      %23 = vector.load %arg9[%c0_19, %c0_20] : memref<8x128xf32, #tpu.memory_space<vmem>>, vector<8x128xf32>
      %cst_21 = arith.constant dense<0.000000e+00> : vector<8x128xf32>
      %24 = vector.multi_reduction <add>, %22, %cst_21 [0] : vector<2x8x128xf32> to vector<8x128xf32>
      %25 = arith.addf %23, %24 : vector<8x128xf32>
      %c0_22 = arith.constant 0 : index
      %c0_23 = arith.constant 0 : index
      %26 = vector.load %arg9[%c0_22, %c0_23] : memref<8x128xf32, #tpu.memory_space<vmem>>, vector<8x128xf32>
      tpu.vector_store %arg9[%c0_22, %c0_23], %25 {strides = array<i32>} : memref<8x128xf32, #tpu.memory_space<vmem>>, vector<8x128xf32>,
      %c0_24 = arith.constant 0 : index
      %c0_25 = arith.constant 0 : index
      %27 = vector.load %arg10[%c0_24, %c0_25] : memref<8x128xf32, #tpu.memory_space<vmem>>, vector<8x128xf32>
      %28 = arith.mulf %22, %22 : vector<2x8x128xf32>
      %cst_26 = arith.constant dense<0.000000e+00> : vector<8x128xf32>
      %29 = vector.multi_reduction <add>, %28, %cst_26 [0] : vector<2x8x128xf32> to vector<8x128xf32>
      %30 = arith.addf %27, %29 : vector<8x128xf32>
      %c0_27 = arith.constant 0 : index
      %c0_28 = arith.constant 0 : index
      %31 = vector.load %arg10[%c0_27, %c0_28] : memref<8x128xf32, #tpu.memory_space<vmem>>, vector<8x128xf32>
      tpu.vector_store %arg10[%c0_27, %c0_28], %30 {strides = array<i32>} : memref<8x128xf32, #tpu.memory_space<vmem>>, vector<8x128xf32>,
      %c0_i32_29 = arith.constant 0 : i32
      %32 = arith.cmpi eq, %arg1, %c0_i32_29 : i32
      %33 = arith.extui %32 : i1 to i32
      %c0_i32_30 = arith.constant 0 : i32
      %34 = arith.cmpi ne, %33, %c0_i32_30 : i32
      scf.if %34 {
        %c0_31 = arith.constant 0 : index
        %c0_32 = arith.constant 0 : index
        %35 = vector.load %arg9[%c0_31, %c0_32] : memref<8x128xf32, #tpu.memory_space<vmem>>, vector<8x128xf32>
        %cst_33 = arith.constant dense<0.000000e+00> : vector<128xf32>
        %36 = vector.multi_reduction <add>, %35, %cst_33 [0] : vector<8x128xf32> to vector<128xf32>
        %37 = vector.shape_cast %36 : vector<128xf32> to vector<1x128xf32>
        %c0_34 = arith.constant 0 : index
        %c0_35 = arith.constant 0 : index
        %38 = vector.load %arg10[%c0_34, %c0_35] : memref<8x128xf32, #tpu.memory_space<vmem>>, vector<8x128xf32>
        %cst_36 = arith.constant dense<0.000000e+00> : vector<128xf32>
        %39 = vector.multi_reduction <add>, %38, %cst_36 [0] : vector<8x128xf32> to vector<128xf32>
        %40 = vector.shape_cast %39 : vector<128xf32> to vector<1x128xf32>
        %c0_37 = arith.constant 0 : index
        %c0_38 = arith.constant 0 : index
        %41 = vector.load %arg7[%c0_37, %c0_38] : memref<1x128xf32, #tpu.memory_space<vmem>>, vector<1x128xf32>
        tpu.vector_store %arg7[%c0_37, %c0_38], %37 {strides = array<i32>} : memref<1x128xf32, #tpu.memory_space<vmem>>, vector<1x128xf32>,
        %c0_39 = arith.constant 0 : index
        %c0_40 = arith.constant 0 : index
        %42 = vector.load %arg8[%c0_39, %c0_40] : memref<1x128xf32, #tpu.memory_space<vmem>>, vector<1x128xf32>
        tpu.vector_store %arg8[%c0_39, %c0_40], %40 {strides = array<i32>} : memref<1x128xf32, #tpu.memory_space<vmem>>, vector<1x128xf32>,
      } else {
      }
    } else {
    }
    return
  }
  func.func @transform_0(%arg0: i32, %arg1: i32, %arg2: i32) -> (i32, i32) {
    %c0_i32 = arith.constant 0 : i32
    return %arg1, %arg2 : i32, i32
  }
  func.func @transform_1(%arg0: i32, %arg1: i32, %arg2: i32) -> (i32, i32) {
    %c0_i32 = arith.constant 0 : i32
    return %arg2, %arg0 : i32, i32
  }
  func.func @transform_2(%arg0: i32, %arg1: i32, %arg2: i32) -> (i32, i32) {
    %c0_i32 = arith.constant 0 : i32
    %c0_i32_0 = arith.constant 0 : i32
    return %c0_i32, %arg0 : i32, i32
  }
  func.func @transform_3(%arg0: i32, %arg1: i32, %arg2: i32) -> (i32, i32) {
    %c0_i32 = arith.constant 0 : i32
    return %arg1, %arg0 : i32, i32
  }
  func.func @transform_4(%arg0: i32, %arg1: i32, %arg2: i32) -> (i32, i32) {
    %c0_i32 = arith.constant 0 : i32
    %c0_i32_0 = arith.constant 0 : i32
    return %c0_i32, %arg0 : i32, i32
  }
  func.func @transform_5(%arg0: i32, %arg1: i32, %arg2: i32) -> (i32, i32) {
    %c0_i32 = arith.constant 0 : i32
    %c0_i32_0 = arith.constant 0 : i32
    return %c0_i32, %arg0 : i32, i32
  }
}

</mosaic_0001>

<bundles_post_ra>
// kernel: linear_with_stats.1
= control target key start
LH: loop header
LB: loop body
LE: loop exit
PB: predicated region body
PF: predicated region fallthrough
CT: control target
= control target key end

     0   :  { %11 = vsyncpa [#allocation5], 0  ;;  %s413_s0 = inlined_call_operand.vmem [shape: bf16[16,128], index: 0, kind: input, shape index: {}]   ;;  %s414_s1 = inlined_call_operand.hbm [shape: bf16[128,128], index: 1, kind: input, shape index: {}]   ;;  %s415_s2 = inlined_call_operand.vmem [shape: f32[1,128], index: 2, kind: input, shape index: {}]   ;;  %s416_s3 = inlined_call_operand.hbm [shape: f32[16,128], index: 3, kind: output, shape index: {0}]   ;;  %s417_s4 = inlined_call_operand.vmem [shape: f32[1,128], index: 4, kind: output, shape index: {1}]   ;;  %s418_s5 = inlined_call_operand.vmem [shape: f32[1,128], index: 5, kind: output, shape index: {2}]  }
   0x1   :  { %12 = vsyncpa [#allocation6], 0  ;;  %s339_s18 = smov [#allocation4]   ;;  %s291_s22 = scalar_lea.hbm %s414_s1, 1024 }
   0x2   :  { %s20_s19 = sshll.u32 %s339_s18, 4  ;;  %p292_p0 = scmp.ne.s32.totalorder %s414_s1, %s291_s22  ;;  %s21_s19 = int_to_ptr.vmem [resolvable:$true] %s20_s19 }
   0x3   :  { %p295_p1 = scmp.lt.u32.totalorder %s291_s22, %s414_s1 }
   0x5   :  { %p297_p2 = pnand %p295_p1, %p292_p0 }
   0x7   :  { %300 = shalt.err (!%p297_p2)
}
   0x8   :  { %s301_s27 = scalar_lea.vmem %s21_s19, 1024  ;;  %p306_p4 = scmp.lt.s32.totalorder %s21_s19, %s21_s19 }
   0x9   :  { %p302_p3 = scmp.ne.s32.totalorder %s21_s19, %s301_s27  ;;  %p307_p5 = scmp.lt.s32.totalorder %s301_s27, %s301_s27 }
   0xb   :  { %p308_p6 = por %p307_p5, %p306_p4 }
   0xd   :  { %p309_p7 = pnand %p308_p6, %p302_p3 }
   0xf   :  { %312 = shalt.err (!%p309_p7)
}
  0x10   :  { %s340_s28 = smov 64   ;;  %s341_s29 = smov 4  }
  0x11   :  { %26 = dma.hbm_to_vmem [thread:$0]  %s414_s1, 1024, %s21_s19, [#allocation5], %s340_s28, %s340_s28, %s341_s29  }
  0x12   :  { %335 = dma.done.wait [#allocation5], 1024  }
  0x13   :  { %336 = vsyncadd [#allocation5], 4294966272  ;;  %v342_v0 = vmov 0.0   ;;  %vm343_vm0 = vmmov 0   ;;  %v282_v1 = vld [vmem:[#allocation4] sm:$0xff]   ;;  %v283_v2 = vld [vmem:[#allocation4 + $0x8] sm:$0xff]  }
  0x14   :  { %254 = vmatprep.subr.bf16.mxu0 %v342_v0  ;;  %270 = vmatprep.mubr.msk.bf16.mxu0 %vm343_vm0, %v342_v0  ;;  %v284_v3 = vld [vmem:[#allocation4 + $0x10] sm:$0xff]   ;;  %v285_v4 = vld [vmem:[#allocation4 + $0x18] sm:$0xff]   ;;  %v286_v5 = vld [vmem:[#allocation4 + $0x20] sm:$0xff]   ;;  %s344_s10 = smov [#allocation7]  }
  0x15   :  { %255 = vmatpush3.bf16.msra.mxu0 %v282_v1  ;;  %v287_v6 = vld [vmem:[#allocation4 + $0x28] sm:$0xff]   ;;  %v288_v7 = vld [vmem:[#allocation4 + $0x30] sm:$0xff]   ;;  %v289_v8 = vld [vmem:[#allocation4 + $0x38] sm:$0xff]   ;;  %s215_s11 = sshll.u32 %s344_s10, 4  ;;  %s216_s11 = int_to_ptr.vmem [resolvable:$true] %s215_s11 }
  0x16   :  { %256 = vmatprep.subr.bf16.mxu0 %v342_v0  ;;  %v290_v9 = vld [vmem:[%s413_s0] sm:$0xff]   ;;  %s313_s0 = scalar_lea.vmem %s216_s11, 256  ;;  %p318_p9 = scmp.lt.s32.totalorder %s216_s11, %s216_s11 }
  0x17   :  { %v244_v11 = vld [vmem:[%s415_s2] ss:$0 sm:$0xff]  ;;  %p314_p8 = scmp.ne.s32.totalorder %s216_s11, %s313_s0  ;;  %p319_p10 = scmp.lt.s32.totalorder %s313_s0, %s313_s0 }
  0x19   :  { %257 = vmatpush3.bf16.msra.mxu0 %v283_v2  ;;  %p320_p11 = por %p319_p10, %p318_p9 }
  0x1a   :  { %258 = vmatprep.subr.bf16.mxu0 %v342_v0 }
  0x1b   :  { %p321_p12 = pnand %p320_p11, %p314_p8 }
  0x1d   :  { %259 = vmatpush3.bf16.msra.mxu0 %v284_v3 }
  0x1e   :  { %260 = vmatprep.subr.bf16.mxu0 %v342_v0 }
  0x21   :  { %261 = vmatpush3.bf16.msra.mxu0 %v285_v4 }
  0x22   :  { %262 = vmatprep.subr.bf16.mxu0 %v342_v0 }
  0x25   :  { %263 = vmatpush3.bf16.msra.mxu0 %v286_v5 }
  0x26   :  { %264 = vmatprep.subr.bf16.mxu0 %v342_v0 }
  0x29   :  { %265 = vmatpush3.bf16.msra.mxu0 %v287_v6 }
  0x2a   :  { %266 = vmatprep.subr.bf16.mxu0 %v342_v0 }
  0x2d   :  { %267 = vmatpush3.bf16.msra.mxu0 %v288_v7 }
  0x2e   :  { %268 = vmatprep.subr.bf16.mxu0 %v342_v0 }
  0x31   :  { %269 = vmatpush3.bf16.msra.mxu0 %v289_v8 }
  0x34   :  { %271 = vmatmul.mubr.bf16.vlgmr.msra.gmra.mrb[0].mxu0 %v290_v9 }
 0x107   :  { %v154_v10 = vpop.f32.mrb[0].mxu0 }
 0x108   :  { %v272_v12 = vpop.f32.mrb[1].mxu0  ;;  %v177_v15 = vadd.f32 %v244_v11, %v154_v10 }
 0x109   :  { %v157_v13 = vpop.f32.mrb[2].mxu0 }
 0x10a   :  { %v273_v14 = vpop.f32.mrb[3].mxu0  ;;  %v178_v16 = vadd.f32 %v244_v11, %v157_v13  ;;  %179 = vst [vmem:[#allocation7] sm:$0xff] %v177_v15  ;;  %v186_v18 = vmul.f32 %v177_v15, %v177_v15 }
 0x10c   :  { %180 = vst [vmem:[#allocation7 + $0x8] sm:$0xff] %v178_v16  ;;  %v182_v17 = vadd.f32 %v178_v16, %v177_v15  ;;  %v187_v19 = vmul.f32 %v178_v16, %v178_v16 }
 0x10d   :  { %324 = shalt.err (!%p321_p12)
}
 0x10e   :  { %s325_s13 = scalar_lea.hbm %s416_s3, 256 }
 0x10f   :  { %p326_p13 = scmp.ne.s32.totalorder %s416_s3, %s325_s13  ;;  %p329_p0 = scmp.lt.u32.totalorder %s325_s13, %s416_s3 }
 0x111   :  { %p331_p1 = pnand %p329_p0, %p326_p13 }
 0x113   :  { %334 = shalt.err (!%p331_p1)
}
 0x114   :  { %s345_s18 = smov 128   ;;  %s346_s19 = smov 8   ;;  %v188_v20 = vadd.f32 %v187_v19, %v186_v18  ;;  %v195_v21 = vrot.slane %v182_v17, 4 }
 0x115   :  { %221 = dma.vmem_to_hbm [thread:$0]  %s216_s11, 256, %s416_s3, [#allocation6], %s345_s18, %s345_s18, %s346_s19  }
 0x116   :  { %v196_v22 = vadd.f32 %v195_v21, %v182_v17  ;;  %v202_v23 = vrot.slane %v188_v20, 4 }
 0x118   :  { %v197_v24 = vrot.slane %v196_v22, 2  ;;  %v203_v25 = vadd.f32 %v202_v23, %v188_v20 }
 0x11a   :  { %v198_v26 = vadd.f32 %v197_v24, %v196_v22  ;;  %v204_v27 = vrot.slane %v203_v25, 2 }
 0x11c   :  { %v199_v28 = vrot.slane %v198_v26, 1  ;;  %v205_v29 = vadd.f32 %v204_v27, %v203_v25 }
 0x11e   :  { %v200_v30 = vadd.f32 %v199_v28, %v198_v26  ;;  %v206_v31 = vrot.slane %v205_v29, 1 }
 0x120   :  { %v207_v32 = vadd.f32 %v206_v31, %v205_v29  ;;  %208 = vst [vmem:[%s417_s4] sm:$0x1] %v200_v30 }
 0x122   :  { %209 = vst [vmem:[%s418_s5] sm:$0x1] %v207_v32 }
 0x123   :  { %337 = dma.done.wait [#allocation6], 256  }
 0x124   :  { %338 = vsyncadd [#allocation6], 4294967040 }
 0x125   :  { %233 = vsyncpa [#allocation5], 1 }
 0x126   :  { %234 = vsyncpa [#allocation6], 1 }

</bundles_post_ra>
